<compile_context>
chip_gen: v5e
topology: v5e:2x2
jax: 0.10.0
libtpu: 0.0.40
codegen_flags: <defaults>
</compile_context>

<pallas_src>
import functools

import jax
import jax.numpy as jnp
from jax.experimental import pallas as pl
from jax.experimental.pallas import tpu as pltpu


LANE = 128
_MAX_TILE = 512                    # f32/bf16 tile cap: fits v7x 64 MiB VMEM easily
_VMEM_LIMIT = 32 * 1024 * 1024     # explicit scoped-VMEM budget (safe on all gens)


def _round_up(x, m):
    return ((x + m - 1) // m) * m


def _pad_dim(dim, max_tile=_MAX_TILE):
    """Pad `dim` to a lane-aligned size and pick a tile that divides it."""
    padded = _round_up(dim, LANE)
    for tile in (512, 256, 128):
        if tile <= max_tile and padded % tile == 0:
            return padded, tile
    tile = max_tile
    return _round_up(padded, tile), tile


# ----------------------------------------------------------------------------
# Pallas kernel: tiled  O = act( A @ B + bias )  with f32 VMEM accumulator.
#   grid = (row_tiles, k_tiles); reduction axis last, output resident across k.
# ----------------------------------------------------------------------------
def _matmul_bias_kernel(a_ref, b_ref, bias_ref, o_ref, acc_ref, *, apply_relu):
    k = pl.program_id(1)

    @pl.when(k == 0)
    def _():
        acc_ref[...] = jnp.zeros_like(acc_ref)

    acc_ref[...] += jnp.dot(a_ref[...], b_ref[...],
                            preferred_element_type=jnp.float32)

    @pl.when(k == pl.num_programs(1) - 1)
    def _():
        out = acc_ref[...] + bias_ref[...]          # f32 epilogue (bias broadcast)
        if apply_relu:
            out = jnp.maximum(out, 0.0)
        o_ref[...] = out.astype(o_ref.dtype)


def _tiled_matmul(a, b, bias, *, tm, tk, apply_relu, out_dtype):
    """O = act(A @ B + bias); A:(M,K), B:(K,N), bias:(1,N). M%tm==0, K%tk==0."""
    m, k_dim = a.shape
    n = b.shape[1]
    grid = (m // tm, k_dim // tk)

    flops = 2 * m * k_dim * n
    bytes_accessed = (
        a.size * a.dtype.itemsize
        + b.size * b.dtype.itemsize
        + bias.size * bias.dtype.itemsize
        + m * n * jnp.dtype(out_dtype).itemsize
    )

    kernel = functools.partial(_matmul_bias_kernel, apply_relu=apply_relu)
    return pl.pallas_call(
        kernel,
        out_shape=jax.ShapeDtypeStruct((m, n), out_dtype),
        grid_spec=pltpu.PrefetchScalarGridSpec(
            num_scalar_prefetch=0,
            grid=grid,
            in_specs=[
                pl.BlockSpec((tm, tk), lambda i, k: (i, k)),   # A row/col tile
                pl.BlockSpec((tk, n), lambda i, k: (k, 0)),    # B k-slab, lane-dense
                pl.BlockSpec((1, n), lambda i, k: (0, 0)),     # bias (full array)
            ],
            out_specs=pl.BlockSpec((tm, n), lambda i, k: (i, 0)),  # resident over k
            scratch_shapes=[pltpu.VMEM((tm, n), jnp.float32)],
        ),
        compiler_params=pltpu.CompilerParams(
            dimension_semantics=("parallel", "arbitrary"),
            vmem_limit_bytes=_VMEM_LIMIT,
        ),
        cost_estimate=pl.CostEstimate(
            flops=flops, transcendentals=0, bytes_accessed=bytes_accessed),
    )(a, b, bias)


# ----------------------------------------------------------------------------
# Glue: dense symmetric-normalized adjacency from edge_index (GCN normalization)
# ----------------------------------------------------------------------------
def normalized_adjacency(edge_index, num_nodes):
    src, dst = edge_index[0], edge_index[1]
    adj = jnp.zeros((num_nodes, num_nodes), jnp.float32)
    adj = adj.at[src, dst].set(1.0)
    adj = jnp.maximum(adj, jnp.eye(num_nodes, dtype=jnp.float32))  # self-loops
    deg = adj.sum(axis=1)
    d_inv_sqrt = jnp.where(deg > 0, 1.0 / jnp.sqrt(deg), 0.0)
    return d_inv_sqrt[:, None] * adj * d_inv_sqrt[None, :]


# ----------------------------------------------------------------------------
# GCN forward (eval mode: dropout = identity)
# ----------------------------------------------------------------------------
def gcn_forward(x, edge_index, params):
    n, f_in = x.shape
    hidden = params["w1"].shape[1]
    num_classes = params["w2"].shape[1]

    n_pad, tile_n = _pad_dim(n)
    f_in_pad, tile_fin = _pad_dim(f_in)
    hid_pad, tile_hid = _pad_dim(hidden)
    cls_pad = _round_up(num_classes, LANE)

    a_hat = normalized_adjacency(edge_index, n)

    # Zero-pad to lane-aligned tiles, cast matmul operands to bf16 (f32 accumulate).
    a_p = jnp.pad(a_hat, ((0, n_pad - n), (0, n_pad - n))).astype(jnp.bfloat16)
    x_p = jnp.pad(x, ((0, n_pad - n), (0, f_in_pad - f_in))).astype(jnp.bfloat16)
    w1_p = jnp.pad(params["w1"],
                   ((0, f_in_pad - f_in), (0, hid_pad - hidden))).astype(jnp.bfloat16)
    b1_p = jnp.pad(params["b1"], ((0, 0), (0, hid_pad - hidden))).astype(jnp.float32)
    w2_p = jnp.pad(params["w2"],
                   ((0, hid_pad - hidden), (0, cls_pad - num_classes))).astype(jnp.bfloat16)
    b2_p = jnp.pad(params["b2"], ((0, 0), (0, cls_pad - num_classes))).astype(jnp.float32)

    zero_b_hid = jnp.zeros((1, hid_pad), jnp.float32)
    zero_b_cls = jnp.zeros((1, cls_pad), jnp.float32)

    # ---- layer 1: H = relu(A_hat @ (X @ W1) + b1) ----
    xw1 = _tiled_matmul(x_p, w1_p, zero_b_hid, tm=tile_n, tk=tile_fin,
                        apply_relu=False, out_dtype=jnp.bfloat16)
    h = _tiled_matmul(a_p, xw1, b1_p, tm=tile_n, tk=tile_n,
                      apply_relu=True, out_dtype=jnp.bfloat16)

    # dropout(p, training=False) -> identity (eval-mode forward)

    # ---- layer 2: O = A_hat @ (H @ W2) + b2 ----
    xw2 = _tiled_matmul(h, w2_p, zero_b_cls, tm=tile_n, tk=tile_hid,
                        apply_relu=False, out_dtype=jnp.bfloat16)
    out = _tiled_matmul(a_p, xw2, b2_p, tm=tile_n, tk=tile_n,
                        apply_relu=False, out_dtype=jnp.float32)

    return out[:n, :num_classes]


def init_params(key, num_features, hidden_channels, num_classes):
    k1, k2, k3, k4 = jax.random.split(key, 4)
    # Glorot-uniform style init (shapes match GCNConv weights); small random
    # biases so the bias-add path is actually exercised.
    lim1 = jnp.sqrt(6.0 / (num_features + hidden_channels))
    lim2 = jnp.sqrt(6.0 / (hidden_channels + num_classes))
    return {
        "w1": jax.random.uniform(
            k1, (num_features, hidden_channels), jnp.float32, -lim1, lim1),
        "b1": 0.01 * jax.random.normal(k3, (1, hidden_channels), jnp.float32),
        "w2": jax.random.uniform(
            k2, (hidden_channels, num_classes), jnp.float32, -lim2, lim2),
        "b2": 0.01 * jax.random.normal(k4, (1, num_classes), jnp.float32),
    }


if __name__ == "__main__":
    # Small synthetic graph consistent with the module's forward signature.
    N = 16            # num nodes
    F_IN = 32         # num_features (PubMed would be 500; small synthetic here)
    HIDDEN = 32       # hidden_channels
    NUM_CLASSES = 8   # num_classes (PubMed would be 3; small synthetic here)
    NUM_EDGES = 40

    key = jax.random.PRNGKey(0)
    kx, ke, kp = jax.random.split(key, 3)

    # Node features (row-normalized, mimicking NormalizeFeatures()).
    x = jax.random.uniform(kx, (N, F_IN), jnp.float32)
    x = x / jnp.clip(x.sum(axis=1, keepdims=True), 1e-12)

    # Undirected synthetic edge_index (2, 2*NUM_EDGES), no self-loops.
    src = jax.random.randint(ke, (NUM_EDGES,), 0, N)
    dst = (src + 1 + jax.random.randint(jax.random.fold_in(ke, 1),
                                        (NUM_EDGES,), 0, N - 1)) % N
    edge_index = jnp.stack(
        [jnp.concatenate([src, dst]), jnp.concatenate([dst, src])], axis=0
    ).astype(jnp.int32)

    params = init_params(kp, F_IN, HIDDEN, NUM_CLASSES)

    out = jax.jit(gcn_forward)(x, edge_index, params)
    out = jax.block_until_ready(out)

    # Pure-JAX f32 reference check (kernel path uses bf16 operands -> looser tol).
    a_hat = normalized_adjacency(edge_index, N)
    h_ref = jnp.maximum(a_hat @ (x @ params["w1"]) + params["b1"], 0.0)
    out_ref = a_hat @ (h_ref @ params["w2"]) + params["b2"]
    assert out.shape == (N, NUM_CLASSES)
    assert jnp.allclose(out, out_ref, atol=2e-2, rtol=5e-2), (
        float(jnp.max(jnp.abs(out - out_ref))))

    print("KERNEL_OK")
</pallas_src>

<mosaic_0001>
module attributes {stable_mosaic.version = 11 : i64} {
  func.func @_matmul_bias_kernel(%arg0: i32, %arg1: i32, %arg2: memref<128x128xbf16, #tpu.memory_space<vmem>>, %arg3: memref<128x128xbf16, #tpu.memory_space<vmem>>, %arg4: memref<1x128xf32, #tpu.memory_space<vmem>>, %arg5: memref<128x128xbf16, #tpu.memory_space<vmem>>, %arg6: memref<128x128xf32, #tpu.memory_space<vmem>>) attributes {dimension_semantics = [#tpu.dimension_semantics<parallel>, #tpu.dimension_semantics<arbitrary>], iteration_bounds = array<i64: 1, 1>, scalar_prefetch = 0 : i64, scratch_operands = 1 : i64, tpu.core_type = #tpu.core_type<tc>, window_params = [{transform_indices = @transform_0, window_bounds = array<i64: 128, 128>}, {transform_indices = @transform_1, window_bounds = array<i64: 128, 128>}, {pipeline_mode = #tpu.pipeline_mode<synchronous>, transform_indices = @transform_2, window_bounds = array<i64: 1, 128>}, {transform_indices = @transform_3, window_bounds = array<i64: 128, 128>}]} {
    %c0_i32 = arith.constant 0 : i32
    %0 = arith.cmpi eq, %arg1, %c0_i32 : i32
    %1 = arith.extui %0 : i1 to i32
    %c0_i32_0 = arith.constant 0 : i32
    %2 = arith.cmpi ne, %1, %c0_i32_0 : i32
    scf.if %2 {
      %cst_10 = arith.constant 0.000000e+00 : f32
      %12 = vector.broadcast %cst_10 : f32 to vector<128x128xf32>
      %c0_11 = arith.constant 0 : index
      %c0_12 = arith.constant 0 : index
      %13 = vector.load %arg6[%c0_11, %c0_12] : memref<128x128xf32, #tpu.memory_space<vmem>>, vector<128x128xf32>
      tpu.vector_store %arg6[%c0_11, %c0_12], %12 {strides = array<i32>} : memref<128x128xf32, #tpu.memory_space<vmem>>, vector<128x128xf32>,
    } else {
    }
    %c0 = arith.constant 0 : index
    %c0_1 = arith.constant 0 : index
    %3 = vector.load %arg6[%c0, %c0_1] : memref<128x128xf32, #tpu.memory_space<vmem>>, vector<128x128xf32>
    %c0_2 = arith.constant 0 : index
    %c0_3 = arith.constant 0 : index
    %4 = vector.load %arg2[%c0_2, %c0_3] : memref<128x128xbf16, #tpu.memory_space<vmem>>, vector<128x128xbf16>
    %c0_4 = arith.constant 0 : index
    %c0_5 = arith.constant 0 : index
    %5 = vector.load %arg3[%c0_4, %c0_5] : memref<128x128xbf16, #tpu.memory_space<vmem>>, vector<128x128xbf16>
    %cst = arith.constant dense<0.000000e+00> : vector<128x128xf32>
    %6 = tpu.matmul %4, %5, %cst {dimension_numbers = #tpu.dot_dimension_numbers<[1], [0], [0], [1], [0, 0, 1, 1], [], []>} : vector<128x128xbf16>, vector<128x128xbf16>, vector<128x128xf32> -> vector<128x128xf32>
    %7 = arith.addf %3, %6 : vector<128x128xf32>
    %c0_6 = arith.constant 0 : index
    %c0_7 = arith.constant 0 : index
    %8 = vector.load %arg6[%c0_6, %c0_7] : memref<128x128xf32, #tpu.memory_space<vmem>>, vector<128x128xf32>
    tpu.vector_store %arg6[%c0_6, %c0_7], %7 {strides = array<i32>} : memref<128x128xf32, #tpu.memory_space<vmem>>, vector<128x128xf32>,
    %c0_i32_8 = arith.constant 0 : i32
    %9 = arith.cmpi eq, %arg1, %c0_i32_8 : i32
    %10 = arith.extui %9 : i1 to i32
    %c0_i32_9 = arith.constant 0 : i32
    %11 = arith.cmpi ne, %10, %c0_i32_9 : i32
    scf.if %11 {
      %c0_10 = arith.constant 0 : index
      %c0_11 = arith.constant 0 : index
      %12 = vector.load %arg6[%c0_10, %c0_11] : memref<128x128xf32, #tpu.memory_space<vmem>>, vector<128x128xf32>
      %c0_12 = arith.constant 0 : index
      %c0_13 = arith.constant 0 : index
      %13 = vector.load %arg4[%c0_12, %c0_13] : memref<1x128xf32, #tpu.memory_space<vmem>>, vector<1x128xf32>
      %14 = vector.broadcast %13 : vector<1x128xf32> to vector<128x128xf32>
      %15 = arith.addf %12, %14 : vector<128x128xf32>
      %16 = arith.truncf %15 : vector<128x128xf32> to vector<128x128xbf16>
      %c0_14 = arith.constant 0 : index
      %c0_15 = arith.constant 0 : index
      %17 = vector.load %arg5[%c0_14, %c0_15] : memref<128x128xbf16, #tpu.memory_space<vmem>>, vector<128x128xbf16>
      tpu.vector_store %arg5[%c0_14, %c0_15], %16 {strides = array<i32>} : memref<128x128xbf16, #tpu.memory_space<vmem>>, vector<128x128xbf16>,
    } else {
    }
    return
  }
  func.func @transform_0(%arg0: i32, %arg1: i32) -> (i32, i32) {
    %c0_i32 = arith.constant 0 : i32
    return %arg0, %arg1 : i32, i32
  }
  func.func @transform_1(%arg0: i32, %arg1: i32) -> (i32, i32) {
    %c0_i32 = arith.constant 0 : i32
    %c0_i32_0 = arith.constant 0 : i32
    return %arg1, %c0_i32 : i32, i32
  }
  func.func @transform_2(%arg0: i32, %arg1: i32) -> (i32, i32) {
    %c0_i32 = arith.constant 0 : i32
    %c0_i32_0 = arith.constant 0 : i32
    %c0_i32_1 = arith.constant 0 : i32
    return %c0_i32, %c0_i32_0 : i32, i32
  }
  func.func @transform_3(%arg0: i32, %arg1: i32) -> (i32, i32) {
    %c0_i32 = arith.constant 0 : i32
    %c0_i32_0 = arith.constant 0 : i32
    return %arg0, %c0_i32 : i32, i32
  }
}

module attributes {stable_mosaic.version = 11 : i64} {
  func.func @_matmul_bias_kernel(%arg0: i32, %arg1: i32, %arg2: memref<128x128xbf16, #tpu.memory_space<vmem>>, %arg3: memref<128x128xbf16, #tpu.memory_space<vmem>>, %arg4: memref<1x128xf32, #tpu.memory_space<vmem>>, %arg5: memref<128x128xbf16, #tpu.memory_space<vmem>>, %arg6: memref<128x128xf32, #tpu.memory_space<vmem>>) attributes {dimension_semantics = [#tpu.dimension_semantics<parallel>, #tpu.dimension_semantics<arbitrary>], iteration_bounds = array<i64: 1, 1>, scalar_prefetch = 0 : i64, scratch_operands = 1 : i64, tpu.core_type = #tpu.core_type<tc>, window_params = [{transform_indices = @transform_0, window_bounds = array<i64: 128, 128>}, {transform_indices = @transform_1, window_bounds = array<i64: 128, 128>}, {pipeline_mode = #tpu.pipeline_mode<synchronous>, transform_indices = @transform_2, window_bounds = array<i64: 1, 128>}, {transform_indices = @transform_3, window_bounds = array<i64: 128, 128>}]} {
    %c0_i32 = arith.constant 0 : i32
    %0 = arith.cmpi eq, %arg1, %c0_i32 : i32
    %1 = arith.extui %0 : i1 to i32
    %c0_i32_0 = arith.constant 0 : i32
    %2 = arith.cmpi ne, %1, %c0_i32_0 : i32
    scf.if %2 {
      %cst_10 = arith.constant 0.000000e+00 : f32
      %12 = vector.broadcast %cst_10 : f32 to vector<128x128xf32>
      %c0_11 = arith.constant 0 : index
      %c0_12 = arith.constant 0 : index
      %13 = vector.load %arg6[%c0_11, %c0_12] : memref<128x128xf32, #tpu.memory_space<vmem>>, vector<128x128xf32>
      tpu.vector_store %arg6[%c0_11, %c0_12], %12 {strides = array<i32>} : memref<128x128xf32, #tpu.memory_space<vmem>>, vector<128x128xf32>,
    } else {
    }
    %c0 = arith.constant 0 : index
    %c0_1 = arith.constant 0 : index
    %3 = vector.load %arg6[%c0, %c0_1] : memref<128x128xf32, #tpu.memory_space<vmem>>, vector<128x128xf32>
    %c0_2 = arith.constant 0 : index
    %c0_3 = arith.constant 0 : index
    %4 = vector.load %arg2[%c0_2, %c0_3] : memref<128x128xbf16, #tpu.memory_space<vmem>>, vector<128x128xbf16>
    %c0_4 = arith.constant 0 : index
    %c0_5 = arith.constant 0 : index
    %5 = vector.load %arg3[%c0_4, %c0_5] : memref<128x128xbf16, #tpu.memory_space<vmem>>, vector<128x128xbf16>
    %cst = arith.constant dense<0.000000e+00> : vector<128x128xf32>
    %6 = tpu.matmul %4, %5, %cst {dimension_numbers = #tpu.dot_dimension_numbers<[1], [0], [0], [1], [0, 0, 1, 1], [], []>} : vector<128x128xbf16>, vector<128x128xbf16>, vector<128x128xf32> -> vector<128x128xf32>
    %7 = arith.addf %3, %6 : vector<128x128xf32>
    %c0_6 = arith.constant 0 : index
    %c0_7 = arith.constant 0 : index
    %8 = vector.load %arg6[%c0_6, %c0_7] : memref<128x128xf32, #tpu.memory_space<vmem>>, vector<128x128xf32>
    tpu.vector_store %arg6[%c0_6, %c0_7], %7 {strides = array<i32>} : memref<128x128xf32, #tpu.memory_space<vmem>>, vector<128x128xf32>,
    %c0_i32_8 = arith.constant 0 : i32
    %9 = arith.cmpi eq, %arg1, %c0_i32_8 : i32
    %10 = arith.extui %9 : i1 to i32
    %c0_i32_9 = arith.constant 0 : i32
    %11 = arith.cmpi ne, %10, %c0_i32_9 : i32
    scf.if %11 {
      %c0_10 = arith.constant 0 : index
      %c0_11 = arith.constant 0 : index
      %12 = vector.load %arg6[%c0_10, %c0_11] : memref<128x128xf32, #tpu.memory_space<vmem>>, vector<128x128xf32>
      %c0_12 = arith.constant 0 : index
      %c0_13 = arith.constant 0 : index
      %13 = vector.load %arg4[%c0_12, %c0_13] : memref<1x128xf32, #tpu.memory_space<vmem>>, vector<1x128xf32>
      %14 = vector.broadcast %13 : vector<1x128xf32> to vector<128x128xf32>
      %15 = arith.addf %12, %14 : vector<128x128xf32>
      %cst_14 = arith.constant 0.000000e+00 : f32
      %16 = vector.broadcast %cst_14 : f32 to vector<128x128xf32>
      %17 = arith.maximumf %15, %16 : vector<128x128xf32>
      %18 = arith.truncf %17 : vector<128x128xf32> to vector<128x128xbf16>
      %c0_15 = arith.constant 0 : index
      %c0_16 = arith.constant 0 : index
      %19 = vector.load %arg5[%c0_15, %c0_16] : memref<128x128xbf16, #tpu.memory_space<vmem>>, vector<128x128xbf16>
      tpu.vector_store %arg5[%c0_15, %c0_16], %18 {strides = array<i32>} : memref<128x128xbf16, #tpu.memory_space<vmem>>, vector<128x128xbf16>,
    } else {
    }
    return
  }
  func.func @transform_0(%arg0: i32, %arg1: i32) -> (i32, i32) {
    %c0_i32 = arith.constant 0 : i32
    return %arg0, %arg1 : i32, i32
  }
  func.func @transform_1(%arg0: i32, %arg1: i32) -> (i32, i32) {
    %c0_i32 = arith.constant 0 : i32
    %c0_i32_0 = arith.constant 0 : i32
    return %arg1, %c0_i32 : i32, i32
  }
  func.func @transform_2(%arg0: i32, %arg1: i32) -> (i32, i32) {
    %c0_i32 = arith.constant 0 : i32
    %c0_i32_0 = arith.constant 0 : i32
    %c0_i32_1 = arith.constant 0 : i32
    return %c0_i32, %c0_i32_0 : i32, i32
  }
  func.func @transform_3(%arg0: i32, %arg1: i32) -> (i32, i32) {
    %c0_i32 = arith.constant 0 : i32
    %c0_i32_0 = arith.constant 0 : i32
    return %arg0, %c0_i32 : i32, i32
  }
}

module attributes {stable_mosaic.version = 11 : i64} {
  func.func @_matmul_bias_kernel(%arg0: i32, %arg1: i32, %arg2: memref<128x128xbf16, #tpu.memory_space<vmem>>, %arg3: memref<128x128xbf16, #tpu.memory_space<vmem>>, %arg4: memref<1x128xf32, #tpu.memory_space<vmem>>, %arg5: memref<128x128xf32, #tpu.memory_space<vmem>>, %arg6: memref<128x128xf32, #tpu.memory_space<vmem>>) attributes {dimension_semantics = [#tpu.dimension_semantics<parallel>, #tpu.dimension_semantics<arbitrary>], iteration_bounds = array<i64: 1, 1>, scalar_prefetch = 0 : i64, scratch_operands = 1 : i64, tpu.core_type = #tpu.core_type<tc>, window_params = [{transform_indices = @transform_0, window_bounds = array<i64: 128, 128>}, {transform_indices = @transform_1, window_bounds = array<i64: 128, 128>}, {pipeline_mode = #tpu.pipeline_mode<synchronous>, transform_indices = @transform_2, window_bounds = array<i64: 1, 128>}, {transform_indices = @transform_3, window_bounds = array<i64: 128, 128>}]} {
    %c0_i32 = arith.constant 0 : i32
    %0 = arith.cmpi eq, %arg1, %c0_i32 : i32
    %1 = arith.extui %0 : i1 to i32
    %c0_i32_0 = arith.constant 0 : i32
    %2 = arith.cmpi ne, %1, %c0_i32_0 : i32
    scf.if %2 {
      %cst_10 = arith.constant 0.000000e+00 : f32
      %12 = vector.broadcast %cst_10 : f32 to vector<128x128xf32>
      %c0_11 = arith.constant 0 : index
      %c0_12 = arith.constant 0 : index
      %13 = vector.load %arg6[%c0_11, %c0_12] : memref<128x128xf32, #tpu.memory_space<vmem>>, vector<128x128xf32>
      tpu.vector_store %arg6[%c0_11, %c0_12], %12 {strides = array<i32>} : memref<128x128xf32, #tpu.memory_space<vmem>>, vector<128x128xf32>,
    } else {
    }
    %c0 = arith.constant 0 : index
    %c0_1 = arith.constant 0 : index
    %3 = vector.load %arg6[%c0, %c0_1] : memref<128x128xf32, #tpu.memory_space<vmem>>, vector<128x128xf32>
    %c0_2 = arith.constant 0 : index
    %c0_3 = arith.constant 0 : index
    %4 = vector.load %arg2[%c0_2, %c0_3] : memref<128x128xbf16, #tpu.memory_space<vmem>>, vector<128x128xbf16>
    %c0_4 = arith.constant 0 : index
    %c0_5 = arith.constant 0 : index
    %5 = vector.load %arg3[%c0_4, %c0_5] : memref<128x128xbf16, #tpu.memory_space<vmem>>, vector<128x128xbf16>
    %cst = arith.constant dense<0.000000e+00> : vector<128x128xf32>
    %6 = tpu.matmul %4, %5, %cst {dimension_numbers = #tpu.dot_dimension_numbers<[1], [0], [0], [1], [0, 0, 1, 1], [], []>} : vector<128x128xbf16>, vector<128x128xbf16>, vector<128x128xf32> -> vector<128x128xf32>
    %7 = arith.addf %3, %6 : vector<128x128xf32>
    %c0_6 = arith.constant 0 : index
    %c0_7 = arith.constant 0 : index
    %8 = vector.load %arg6[%c0_6, %c0_7] : memref<128x128xf32, #tpu.memory_space<vmem>>, vector<128x128xf32>
    tpu.vector_store %arg6[%c0_6, %c0_7], %7 {strides = array<i32>} : memref<128x128xf32, #tpu.memory_space<vmem>>, vector<128x128xf32>,
    %c0_i32_8 = arith.constant 0 : i32
    %9 = arith.cmpi eq, %arg1, %c0_i32_8 : i32
    %10 = arith.extui %9 : i1 to i32
    %c0_i32_9 = arith.constant 0 : i32
    %11 = arith.cmpi ne, %10, %c0_i32_9 : i32
    scf.if %11 {
      %c0_10 = arith.constant 0 : index
      %c0_11 = arith.constant 0 : index
      %12 = vector.load %arg6[%c0_10, %c0_11] : memref<128x128xf32, #tpu.memory_space<vmem>>, vector<128x128xf32>
      %c0_12 = arith.constant 0 : index
      %c0_13 = arith.constant 0 : index
      %13 = vector.load %arg4[%c0_12, %c0_13] : memref<1x128xf32, #tpu.memory_space<vmem>>, vector<1x128xf32>
      %14 = vector.broadcast %13 : vector<1x128xf32> to vector<128x128xf32>
      %15 = arith.addf %12, %14 : vector<128x128xf32>
      %c0_14 = arith.constant 0 : index
      %c0_15 = arith.constant 0 : index
      %16 = vector.load %arg5[%c0_14, %c0_15] : memref<128x128xf32, #tpu.memory_space<vmem>>, vector<128x128xf32>
      tpu.vector_store %arg5[%c0_14, %c0_15], %15 {strides = array<i32>} : memref<128x128xf32, #tpu.memory_space<vmem>>, vector<128x128xf32>,
    } else {
    }
    return
  }
  func.func @transform_0(%arg0: i32, %arg1: i32) -> (i32, i32) {
    %c0_i32 = arith.constant 0 : i32
    return %arg0, %arg1 : i32, i32
  }
  func.func @transform_1(%arg0: i32, %arg1: i32) -> (i32, i32) {
    %c0_i32 = arith.constant 0 : i32
    %c0_i32_0 = arith.constant 0 : i32
    return %arg1, %c0_i32 : i32, i32
  }
  func.func @transform_2(%arg0: i32, %arg1: i32) -> (i32, i32) {
    %c0_i32 = arith.constant 0 : i32
    %c0_i32_0 = arith.constant 0 : i32
    %c0_i32_1 = arith.constant 0 : i32
    return %c0_i32, %c0_i32_0 : i32, i32
  }
  func.func @transform_3(%arg0: i32, %arg1: i32) -> (i32, i32) {
    %c0_i32 = arith.constant 0 : i32
    %c0_i32_0 = arith.constant 0 : i32
    return %arg0, %c0_i32 : i32, i32
  }
}

</mosaic_0001>

<bundles_post_ra>
// kernel: gcn_forward.5
= control target key start
LH: loop header
LB: loop body
LE: loop exit
PB: predicated region body
PF: predicated region fallthrough
CT: control target
= control target key end

     0   :  { %s597_s1 = inlined_call_operand.vmem [shape: bf16[128,128], index: 1, kind: input, shape index: {}]   ;;  %s598_s2 = inlined_call_operand.vmem [shape: f32[1,128], index: 2, kind: input, shape index: {}]   ;;  %s599_s0 = inlined_call_operand.vmem [shape: bf16[128,128], index: 0, kind: input, shape index: {}]   ;;  %s600_s3 = inlined_call_operand.vmem [shape: bf16[128,128], index: 3, kind: output, shape index: {}]  }
   0x1   :  { %v429_v0 = vld [vmem:[%s597_s1 + $0x38] sm:$0xff]  ;;  %v428_v1 = vld [vmem:[%s597_s1 + $0x30] sm:$0xff]  ;;  %v427_v2 = vld [vmem:[%s597_s1 + $0x28] sm:$0xff] }
   0x2   :  { %178 = vmatpush.bf16.msra.mxu0 %v429_v0  ;;  %477 = vmatpush.bf16.msra.mxu1 %v429_v0  ;;  %v426_v3 = vld [vmem:[%s597_s1 + $0x20] sm:$0xff]  ;;  %v425_v4 = vld [vmem:[%s597_s1 + $0x18] sm:$0xff]  ;;  %v424_v5 = vld [vmem:[%s597_s1 + $0x10] sm:$0xff] }
   0x3   :  { %478 = vmatpush.bf16.msra.mxu2 %v429_v0  ;;  %479 = vmatpush.bf16.msra.mxu3 %v429_v0  ;;  %v423_v6 = vld [vmem:[%s597_s1 + $0x8] sm:$0xff]  ;;  %v422_v7 = vld [vmem:[%s597_s1] sm:$0xff]  ;;  %v416_v9 = vld [vmem:[%s599_s0 + $0x10] sm:$0xff] }
   0x4   :  { %v414_v8 = vld [vmem:[%s599_s0] sm:$0xff]  ;;  %v420_v11 = vld [vmem:[%s599_s0 + $0x30] sm:$0xff]  ;;  %v415_v12 = vld [vmem:[%s599_s0 + $0x8] sm:$0xff] }
   0x5   :  { %v418_v10 = vld [vmem:[%s599_s0 + $0x20] sm:$0xff]  ;;  %v417_v13 = vld [vmem:[%s599_s0 + $0x18] sm:$0xff]  ;;  %v419_v14 = vld [vmem:[%s599_s0 + $0x28] sm:$0xff] }
   0x6   :  { %179 = vmatpush.bf16.msra.mxu0 %v428_v1  ;;  %480 = vmatpush.bf16.msra.mxu1 %v428_v1  ;;  %v421_v15 = vld [vmem:[%s599_s0 + $0x38] sm:$0xff]  ;;  %v501_v18 = vld [vmem:[%s598_s2] ss:$0 sm:$0xff] }
   0x7   :  { %481 = vmatpush.bf16.msra.mxu2 %v428_v1  ;;  %482 = vmatpush.bf16.msra.mxu3 %v428_v1 }
   0xa   :  { %180 = vmatpush.bf16.msra.mxu0 %v427_v2  ;;  %483 = vmatpush.bf16.msra.mxu1 %v427_v2 }
   0xb   :  { %484 = vmatpush.bf16.msra.mxu2 %v427_v2  ;;  %485 = vmatpush.bf16.msra.mxu3 %v427_v2 }
   0xe   :  { %181 = vmatpush.bf16.msra.mxu0 %v426_v3  ;;  %486 = vmatpush.bf16.msra.mxu1 %v426_v3 }
   0xf   :  { %487 = vmatpush.bf16.msra.mxu2 %v426_v3  ;;  %488 = vmatpush.bf16.msra.mxu3 %v426_v3 }
  0x12   :  { %182 = vmatpush.bf16.msra.mxu0 %v425_v4  ;;  %489 = vmatpush.bf16.msra.mxu1 %v425_v4 }
  0x13   :  { %490 = vmatpush.bf16.msra.mxu2 %v425_v4  ;;  %491 = vmatpush.bf16.msra.mxu3 %v425_v4 }
  0x16   :  { %183 = vmatpush.bf16.msra.mxu0 %v424_v5  ;;  %492 = vmatpush.bf16.msra.mxu1 %v424_v5 }
  0x17   :  { %493 = vmatpush.bf16.msra.mxu2 %v424_v5  ;;  %494 = vmatpush.bf16.msra.mxu3 %v424_v5 }
  0x1a   :  { %184 = vmatpush.bf16.msra.mxu0 %v423_v6  ;;  %495 = vmatpush.bf16.msra.mxu1 %v423_v6 }
  0x1b   :  { %496 = vmatpush.bf16.msra.mxu2 %v423_v6  ;;  %497 = vmatpush.bf16.msra.mxu3 %v423_v6 }
  0x1e   :  { %185 = vmatpush.bf16.msra.mxu0 %v422_v7  ;;  %498 = vmatpush.bf16.msra.mxu1 %v422_v7 }
  0x1f   :  { %499 = vmatpush.bf16.msra.mxu2 %v422_v7  ;;  %500 = vmatpush.bf16.msra.mxu3 %v422_v7 }
  0x21   :  { %186 = vmatmul.bf16.vlgmr.msra.gmra.mxu0 %v414_v8  ;;  %196 = vmatmul.bf16.vlgmr.msra.gmra.mxu1 %v416_v9 }
  0x22   :  { %206 = vmatmul.bf16.vlgmr.msra.gmra.mxu2 %v418_v10  ;;  %216 = vmatmul.bf16.vlgmr.msra.gmra.mxu3 %v420_v11 }
  0x31   :  { %191 = vmatmul.bf16.gmra.mxu0 %v415_v12  ;;  %201 = vmatmul.bf16.gmra.mxu1 %v417_v13 }
  0x32   :  { %211 = vmatmul.bf16.gmra.mxu2 %v419_v14  ;;  %221 = vmatmul.bf16.gmra.mxu3 %v421_v15 }
  0x9e   :  { %v187_v16 = vpop.f32.mrf.mxu0  ;;  %v197_v17 = vpop.f32.mrf.mxu1 }
  0x9f   :  { %v282_v19 = vadd.f32 %v501_v18, %v187_v16  ;;  %v286_v20 = vadd.f32 %v501_v18, %v197_v17 }
  0xa1   :  { %v298_v27 = vmax.f32 %v282_v19, 0.0  ;;  %v302_v28 = vmax.f32 %v286_v20, 0.0 }
  0xa5   :  { %v207_v21 = vpop.f32.mrf.mxu2  ;;  %v217_v22 = vpop.f32.mrf.mxu3 }
  0xa6   :  { %v189_v23 = vpop.f32.mrf.mxu0  ;;  %v199_v24 = vpop.f32.mrf.mxu1  ;;  %v290_v33 = vadd.f32 %v501_v18, %v207_v21  ;;  %v294_v34 = vadd.f32 %v501_v18, %v217_v22 }
  0xa7   :  { %v283_v25 = vadd.f32 %v501_v18, %v189_v23  ;;  %v287_v26 = vadd.f32 %v501_v18, %v199_v24 }
  0xa8   :  { %v306_v41 = vmax.f32 %v290_v33, 0.0  ;;  %v310_v42 = vmax.f32 %v294_v34, 0.0 }
  0xa9   :  { %v299_v29 = vmax.f32 %v283_v25, 0.0  ;;  %v303_v30 = vmax.f32 %v287_v26, 0.0 }
  0xab   :  { %v433_v31 = vpack.c.bf16 %v299_v29, %v298_v27  ;;  %v443_v32 = vpack.c.bf16 %v303_v30, %v302_v28 }
  0xad   :  { %434 = vst [vmem:[%s600_s3] sm:$0xff] %v433_v31   ;;  %v209_v35 = vpop.f32.mrf.mxu2  ;;  %v219_v36 = vpop.f32.mrf.mxu3 }
  0xae   :  { %471 = vst [vmem:[%s600_s3 + $0x10] sm:$0xff] %v443_v32   ;;  %v291_v37 = vadd.f32 %v501_v18, %v209_v35  ;;  %v295_v38 = vadd.f32 %v501_v18, %v219_v36  ;;  %v192_v39 = vpop.f32.mrf.mxu0  ;;  %v202_v40 = vpop.f32.mrf.mxu1 }
  0xaf   :  { %v284_v47 = vadd.f32 %v501_v18, %v192_v39  ;;  %v288_v48 = vadd.f32 %v501_v18, %v202_v40 }
  0xb0   :  { %v307_v43 = vmax.f32 %v291_v37, 0.0  ;;  %v311_v44 = vmax.f32 %v295_v38, 0.0 }
  0xb1   :  { %v300_v55 = vmax.f32 %v284_v47, 0.0  ;;  %v304_v56 = vmax.f32 %v288_v48, 0.0 }
  0xb2   :  { %v453_v45 = vpack.c.bf16 %v307_v43, %v306_v41  ;;  %v463_v46 = vpack.c.bf16 %v311_v44, %v310_v42 }
  0xb4   :  { %473 = vst [vmem:[%s600_s3 + $0x20] sm:$0xff] %v453_v45  }
  0xb5   :  { %475 = vst [vmem:[%s600_s3 + $0x30] sm:$0xff] %v463_v46   ;;  %v212_v49 = vpop.f32.mrf.mxu2  ;;  %v222_v50 = vpop.f32.mrf.mxu3 }
  0xb6   :  { %v194_v51 = vpop.f32.mrf.mxu0  ;;  %v204_v52 = vpop.f32.mrf.mxu1  ;;  %v292_v61 = vadd.f32 %v501_v18, %v212_v49  ;;  %v296_v62 = vadd.f32 %v501_v18, %v222_v50 }
  0xb7   :  { %v285_v53 = vadd.f32 %v501_v18, %v194_v51  ;;  %v289_v54 = vadd.f32 %v501_v18, %v204_v52 }
  0xb8   :  { %v308_v3 = vmax.f32 %v292_v61, 0.0  ;;  %v312_v4 = vmax.f32 %v296_v62, 0.0 }
  0xb9   :  { %v301_v57 = vmax.f32 %v285_v53, 0.0  ;;  %v305_v58 = vmax.f32 %v289_v54, 0.0 }
  0xbb   :  { %v438_v59 = vpack.c.bf16 %v301_v57, %v300_v55  ;;  %v448_v60 = vpack.c.bf16 %v305_v58, %v304_v56 }
  0xbd   :  { %470 = vst [vmem:[%s600_s3 + $0x8] sm:$0xff] %v438_v59   ;;  %v214_v63 = vpop.f32.mrf.mxu2  ;;  %v224_v0 = vpop.f32.mrf.mxu3 }
  0xbe   :  { %472 = vst [vmem:[%s600_s3 + $0x18] sm:$0xff] %v448_v60   ;;  %v293_v1 = vadd.f32 %v501_v18, %v214_v63  ;;  %v297_v2 = vadd.f32 %v501_v18, %v224_v0 }
  0xc0   :  { %v309_v5 = vmax.f32 %v293_v1, 0.0  ;;  %v313_v6 = vmax.f32 %v297_v2, 0.0 }
  0xc2   :  { %v458_v7 = vpack.c.bf16 %v309_v5, %v308_v3  ;;  %v468_v8 = vpack.c.bf16 %v313_v6, %v312_v4 }
  0xc4   :  { %474 = vst [vmem:[%s600_s3 + $0x28] sm:$0xff] %v458_v7  }
  0xc5   :  { %476 = vst [vmem:[%s600_s3 + $0x38] sm:$0xff] %v468_v8  }

// kernel: gcn_forward.7
= control target key start
LH: loop header
LB: loop body
LE: loop exit
PB: predicated region body
PF: predicated region fallthrough
CT: control target
= control target key end

     0   :  { %s542_s1 = inlined_call_operand.vmem [shape: bf16[128,128], index: 1, kind: input, shape index: {}]   ;;  %s543_s2 = inlined_call_operand.vmem [shape: f32[1,128], index: 2, kind: input, shape index: {}]   ;;  %s544_s0 = inlined_call_operand.vmem [shape: bf16[128,128], index: 0, kind: input, shape index: {}]   ;;  %s545_s3 = inlined_call_operand.vmem [shape: f32[128,128], index: 3, kind: output, shape index: {}]  }
   0x1   :  { %v397_v0 = vld [vmem:[%s542_s1 + $0x38] sm:$0xff]  ;;  %v396_v1 = vld [vmem:[%s542_s1 + $0x30] sm:$0xff]  ;;  %v395_v2 = vld [vmem:[%s542_s1 + $0x28] sm:$0xff] }
   0x2   :  { %178 = vmatpush.bf16.msra.mxu0 %v397_v0  ;;  %398 = vmatpush.bf16.msra.mxu1 %v397_v0  ;;  %v394_v3 = vld [vmem:[%s542_s1 + $0x20] sm:$0xff]  ;;  %v393_v4 = vld [vmem:[%s542_s1 + $0x18] sm:$0xff]  ;;  %v392_v5 = vld [vmem:[%s542_s1 + $0x10] sm:$0xff] }
   0x3   :  { %399 = vmatpush.bf16.msra.mxu2 %v397_v0  ;;  %400 = vmatpush.bf16.msra.mxu3 %v397_v0  ;;  %v391_v6 = vld [vmem:[%s542_s1 + $0x8] sm:$0xff]  ;;  %v390_v7 = vld [vmem:[%s542_s1] sm:$0xff]  ;;  %v384_v9 = vld [vmem:[%s544_s0 + $0x10] sm:$0xff] }
   0x4   :  { %v382_v8 = vld [vmem:[%s544_s0] sm:$0xff]  ;;  %v388_v11 = vld [vmem:[%s544_s0 + $0x30] sm:$0xff]  ;;  %v383_v12 = vld [vmem:[%s544_s0 + $0x8] sm:$0xff] }
   0x5   :  { %v386_v10 = vld [vmem:[%s544_s0 + $0x20] sm:$0xff]  ;;  %v385_v13 = vld [vmem:[%s544_s0 + $0x18] sm:$0xff]  ;;  %v387_v14 = vld [vmem:[%s544_s0 + $0x28] sm:$0xff] }
   0x6   :  { %179 = vmatpush.bf16.msra.mxu0 %v396_v1  ;;  %401 = vmatpush.bf16.msra.mxu1 %v396_v1  ;;  %v389_v15 = vld [vmem:[%s544_s0 + $0x38] sm:$0xff]  ;;  %v422_v16 = vld [vmem:[%s543_s2] ss:$0 sm:$0xff] }
   0x7   :  { %402 = vmatpush.bf16.msra.mxu2 %v396_v1  ;;  %403 = vmatpush.bf16.msra.mxu3 %v396_v1 }
   0xa   :  { %180 = vmatpush.bf16.msra.mxu0 %v395_v2  ;;  %404 = vmatpush.bf16.msra.mxu1 %v395_v2 }
   0xb   :  { %405 = vmatpush.bf16.msra.mxu2 %v395_v2  ;;  %406 = vmatpush.bf16.msra.mxu3 %v395_v2 }
   0xe   :  { %181 = vmatpush.bf16.msra.mxu0 %v394_v3  ;;  %407 = vmatpush.bf16.msra.mxu1 %v394_v3 }
   0xf   :  { %408 = vmatpush.bf16.msra.mxu2 %v394_v3  ;;  %409 = vmatpush.bf16.msra.mxu3 %v394_v3 }
  0x12   :  { %182 = vmatpush.bf16.msra.mxu0 %v393_v4  ;;  %410 = vmatpush.bf16.msra.mxu1 %v393_v4 }
  0x13   :  { %411 = vmatpush.bf16.msra.mxu2 %v393_v4  ;;  %412 = vmatpush.bf16.msra.mxu3 %v393_v4 }
  0x16   :  { %183 = vmatpush.bf16.msra.mxu0 %v392_v5  ;;  %413 = vmatpush.bf16.msra.mxu1 %v392_v5 }
  0x17   :  { %414 = vmatpush.bf16.msra.mxu2 %v392_v5  ;;  %415 = vmatpush.bf16.msra.mxu3 %v392_v5 }
  0x1a   :  { %184 = vmatpush.bf16.msra.mxu0 %v391_v6  ;;  %416 = vmatpush.bf16.msra.mxu1 %v391_v6 }
  0x1b   :  { %417 = vmatpush.bf16.msra.mxu2 %v391_v6  ;;  %418 = vmatpush.bf16.msra.mxu3 %v391_v6 }
  0x1e   :  { %185 = vmatpush.bf16.msra.mxu0 %v390_v7  ;;  %419 = vmatpush.bf16.msra.mxu1 %v390_v7 }
  0x1f   :  { %420 = vmatpush.bf16.msra.mxu2 %v390_v7  ;;  %421 = vmatpush.bf16.msra.mxu3 %v390_v7 }
  0x21   :  { %186 = vmatmul.bf16.vlgmr.msra.gmra.mxu0 %v382_v8  ;;  %196 = vmatmul.bf16.vlgmr.msra.gmra.mxu1 %v384_v9 }
  0x22   :  { %206 = vmatmul.bf16.vlgmr.msra.gmra.mxu2 %v386_v10  ;;  %216 = vmatmul.bf16.vlgmr.msra.gmra.mxu3 %v388_v11 }
  0x31   :  { %191 = vmatmul.bf16.gmra.mxu0 %v383_v12  ;;  %201 = vmatmul.bf16.gmra.mxu1 %v385_v13 }
  0x32   :  { %211 = vmatmul.bf16.gmra.mxu2 %v387_v14  ;;  %221 = vmatmul.bf16.gmra.mxu3 %v389_v15 }
  0x9e   :  { %v187_v17 = vpop.f32.mrf.mxu0  ;;  %v197_v18 = vpop.f32.mrf.mxu1 }
  0x9f   :  { %v282_v19 = vadd.f32 %v422_v16, %v187_v17  ;;  %v286_v20 = vadd.f32 %v422_v16, %v197_v18 }
  0xa1   :  { %298 = vst [vmem:[%s545_s3] sm:$0xff] %v282_v19 }
  0xa2   :  { %302 = vst [vmem:[%s545_s3 + $0x20] sm:$0xff] %v286_v20 }
  0xa5   :  { %v207_v21 = vpop.f32.mrf.mxu2  ;;  %v217_v22 = vpop.f32.mrf.mxu3 }
  0xa6   :  { %v290_v23 = vadd.f32 %v422_v16, %v207_v21  ;;  %v294_v24 = vadd.f32 %v422_v16, %v217_v22  ;;  %v189_v25 = vpop.f32.mrf.mxu0  ;;  %v199_v26 = vpop.f32.mrf.mxu1 }
  0xa7   :  { %v283_v27 = vadd.f32 %v422_v16, %v189_v25  ;;  %v287_v28 = vadd.f32 %v422_v16, %v199_v26 }
  0xa8   :  { %306 = vst [vmem:[%s545_s3 + $0x40] sm:$0xff] %v290_v23 }
  0xa9   :  { %310 = vst [vmem:[%s545_s3 + $0x60] sm:$0xff] %v294_v24 }
  0xaa   :  { %299 = vst [vmem:[%s545_s3 + $0x8] sm:$0xff] %v283_v27 }
  0xab   :  { %303 = vst [vmem:[%s545_s3 + $0x28] sm:$0xff] %v287_v28 }
  0xad   :  { %v209_v29 = vpop.f32.mrf.mxu2  ;;  %v219_v30 = vpop.f32.mrf.mxu3 }
  0xae   :  { %v291_v31 = vadd.f32 %v422_v16, %v209_v29  ;;  %v295_v32 = vadd.f32 %v422_v16, %v219_v30  ;;  %v192_v33 = vpop.f32.mrf.mxu0  ;;  %v202_v34 = vpop.f32.mrf.mxu1 }
  0xaf   :  { %v284_v35 = vadd.f32 %v422_v16, %v192_v33  ;;  %v288_v36 = vadd.f32 %v422_v16, %v202_v34 }
  0xb0   :  { %307 = vst [vmem:[%s545_s3 + $0x48] sm:$0xff] %v291_v31 }
  0xb1   :  { %311 = vst [vmem:[%s545_s3 + $0x68] sm:$0xff] %v295_v32 }
  0xb2   :  { %300 = vst [vmem:[%s545_s3 + $0x10] sm:$0xff] %v284_v35 }
  0xb3   :  { %304 = vst [vmem:[%s545_s3 + $0x30] sm:$0xff] %v288_v36 }
  0xb5   :  { %v212_v37 = vpop.f32.mrf.mxu2  ;;  %v222_v38 = vpop.f32.mrf.mxu3 }
  0xb6   :  { %v292_v39 = vadd.f32 %v422_v16, %v212_v37  ;;  %v296_v40 = vadd.f32 %v422_v16, %v222_v38  ;;  %v194_v41 = vpop.f32.mrf.mxu0  ;;  %v204_v42 = vpop.f32.mrf.mxu1 }
  0xb7   :  { %v285_v43 = vadd.f32 %v422_v16, %v194_v41  ;;  %v289_v44 = vadd.f32 %v422_v16, %v204_v42 }
  0xb8   :  { %308 = vst [vmem:[%s545_s3 + $0x50] sm:$0xff] %v292_v39 }
  0xb9   :  { %312 = vst [vmem:[%s545_s3 + $0x70] sm:$0xff] %v296_v40 }
  0xba   :  { %301 = vst [vmem:[%s545_s3 + $0x18] sm:$0xff] %v285_v43 }
  0xbb   :  { %305 = vst [vmem:[%s545_s3 + $0x38] sm:$0xff] %v289_v44 }
  0xbd   :  { %v214_v45 = vpop.f32.mrf.mxu2  ;;  %v224_v46 = vpop.f32.mrf.mxu3 }
  0xbe   :  { %v293_v47 = vadd.f32 %v422_v16, %v214_v45  ;;  %v297_v48 = vadd.f32 %v422_v16, %v224_v46 }
  0xc0   :  { %309 = vst [vmem:[%s545_s3 + $0x58] sm:$0xff] %v293_v47 }
  0xc1   :  { %313 = vst [vmem:[%s545_s3 + $0x78] sm:$0xff] %v297_v48 }

// kernel: gcn_forward.4
= control target key start
LH: loop header
LB: loop body
LE: loop exit
PB: predicated region body
PF: predicated region fallthrough
CT: control target
= control target key end

     0   :  { %s581_s1 = inlined_call_operand.vmem [shape: bf16[128,128], index: 1, kind: input, shape index: {}]   ;;  %s582_s2 = inlined_call_operand.vmem [shape: f32[1,128], index: 2, kind: input, shape index: {}]   ;;  %s583_s0 = inlined_call_operand.vmem [shape: bf16[128,128], index: 0, kind: input, shape index: {}]   ;;  %s584_s3 = inlined_call_operand.vmem [shape: bf16[128,128], index: 3, kind: output, shape index: {}]  }
   0x1   :  { %v413_v0 = vld [vmem:[%s581_s1 + $0x38] sm:$0xff]  ;;  %v412_v1 = vld [vmem:[%s581_s1 + $0x30] sm:$0xff]  ;;  %v411_v2 = vld [vmem:[%s581_s1 + $0x28] sm:$0xff] }
   0x2   :  { %178 = vmatpush.bf16.msra.mxu0 %v413_v0  ;;  %461 = vmatpush.bf16.msra.mxu1 %v413_v0  ;;  %v410_v3 = vld [vmem:[%s581_s1 + $0x20] sm:$0xff]  ;;  %v409_v4 = vld [vmem:[%s581_s1 + $0x18] sm:$0xff]  ;;  %v408_v5 = vld [vmem:[%s581_s1 + $0x10] sm:$0xff] }
   0x3   :  { %462 = vmatpush.bf16.msra.mxu2 %v413_v0  ;;  %463 = vmatpush.bf16.msra.mxu3 %v413_v0  ;;  %v407_v6 = vld [vmem:[%s581_s1 + $0x8] sm:$0xff]  ;;  %v406_v7 = vld [vmem:[%s581_s1] sm:$0xff]  ;;  %v400_v9 = vld [vmem:[%s583_s0 + $0x10] sm:$0xff] }
   0x4   :  { %v398_v8 = vld [vmem:[%s583_s0] sm:$0xff]  ;;  %v404_v11 = vld [vmem:[%s583_s0 + $0x30] sm:$0xff]  ;;  %v399_v12 = vld [vmem:[%s583_s0 + $0x8] sm:$0xff] }
   0x5   :  { %v402_v10 = vld [vmem:[%s583_s0 + $0x20] sm:$0xff]  ;;  %v401_v13 = vld [vmem:[%s583_s0 + $0x18] sm:$0xff]  ;;  %v403_v14 = vld [vmem:[%s583_s0 + $0x28] sm:$0xff] }
   0x6   :  { %179 = vmatpush.bf16.msra.mxu0 %v412_v1  ;;  %464 = vmatpush.bf16.msra.mxu1 %v412_v1  ;;  %v405_v15 = vld [vmem:[%s583_s0 + $0x38] sm:$0xff]  ;;  %v485_v18 = vld [vmem:[%s582_s2] ss:$0 sm:$0xff] }
   0x7   :  { %465 = vmatpush.bf16.msra.mxu2 %v412_v1  ;;  %466 = vmatpush.bf16.msra.mxu3 %v412_v1 }
   0xa   :  { %180 = vmatpush.bf16.msra.mxu0 %v411_v2  ;;  %467 = vmatpush.bf16.msra.mxu1 %v411_v2 }
   0xb   :  { %468 = vmatpush.bf16.msra.mxu2 %v411_v2  ;;  %469 = vmatpush.bf16.msra.mxu3 %v411_v2 }
   0xe   :  { %181 = vmatpush.bf16.msra.mxu0 %v410_v3  ;;  %470 = vmatpush.bf16.msra.mxu1 %v410_v3 }
   0xf   :  { %471 = vmatpush.bf16.msra.mxu2 %v410_v3  ;;  %472 = vmatpush.bf16.msra.mxu3 %v410_v3 }
  0x12   :  { %182 = vmatpush.bf16.msra.mxu0 %v409_v4  ;;  %473 = vmatpush.bf16.msra.mxu1 %v409_v4 }
  0x13   :  { %474 = vmatpush.bf16.msra.mxu2 %v409_v4  ;;  %475 = vmatpush.bf16.msra.mxu3 %v409_v4 }
  0x16   :  { %183 = vmatpush.bf16.msra.mxu0 %v408_v5  ;;  %476 = vmatpush.bf16.msra.mxu1 %v408_v5 }
  0x17   :  { %477 = vmatpush.bf16.msra.mxu2 %v408_v5  ;;  %478 = vmatpush.bf16.msra.mxu3 %v408_v5 }
  0x1a   :  { %184 = vmatpush.bf16.msra.mxu0 %v407_v6  ;;  %479 = vmatpush.bf16.msra.mxu1 %v407_v6 }
  0x1b   :  { %480 = vmatpush.bf16.msra.mxu2 %v407_v6  ;;  %481 = vmatpush.bf16.msra.mxu3 %v407_v6 }
  0x1e   :  { %185 = vmatpush.bf16.msra.mxu0 %v406_v7  ;;  %482 = vmatpush.bf16.msra.mxu1 %v406_v7 }
  0x1f   :  { %483 = vmatpush.bf16.msra.mxu2 %v406_v7  ;;  %484 = vmatpush.bf16.msra.mxu3 %v406_v7 }
  0x21   :  { %186 = vmatmul.bf16.vlgmr.msra.gmra.mxu0 %v398_v8  ;;  %196 = vmatmul.bf16.vlgmr.msra.gmra.mxu1 %v400_v9 }
  0x22   :  { %206 = vmatmul.bf16.vlgmr.msra.gmra.mxu2 %v402_v10  ;;  %216 = vmatmul.bf16.vlgmr.msra.gmra.mxu3 %v404_v11 }
  0x31   :  { %191 = vmatmul.bf16.gmra.mxu0 %v399_v12  ;;  %201 = vmatmul.bf16.gmra.mxu1 %v401_v13 }
  0x32   :  { %211 = vmatmul.bf16.gmra.mxu2 %v403_v14  ;;  %221 = vmatmul.bf16.gmra.mxu3 %v405_v15 }
  0x9e   :  { %v187_v16 = vpop.f32.mrf.mxu0  ;;  %v197_v17 = vpop.f32.mrf.mxu1 }
  0x9f   :  { %v282_v23 = vadd.f32 %v485_v18, %v187_v16  ;;  %v286_v24 = vadd.f32 %v485_v18, %v197_v17 }
  0xa5   :  { %v207_v19 = vpop.f32.mrf.mxu2  ;;  %v217_v20 = vpop.f32.mrf.mxu3 }
  0xa6   :  { %v189_v21 = vpop.f32.mrf.mxu0  ;;  %v199_v22 = vpop.f32.mrf.mxu1  ;;  %v290_v31 = vadd.f32 %v485_v18, %v207_v19  ;;  %v294_v32 = vadd.f32 %v485_v18, %v217_v20 }
  0xa7   :  { %v283_v25 = vadd.f32 %v485_v18, %v189_v21  ;;  %v287_v26 = vadd.f32 %v485_v18, %v199_v22 }
  0xa9   :  { %v417_v27 = vpack.c.bf16 %v283_v25, %v282_v23  ;;  %v427_v28 = vpack.c.bf16 %v287_v26, %v286_v24 }
  0xab   :  { %418 = vst [vmem:[%s584_s3] sm:$0xff] %v417_v27  }
  0xac   :  { %455 = vst [vmem:[%s584_s3 + $0x10] sm:$0xff] %v427_v28  }
  0xad   :  { %v209_v29 = vpop.f32.mrf.mxu2  ;;  %v219_v30 = vpop.f32.mrf.mxu3 }
  0xae   :  { %v291_v33 = vadd.f32 %v485_v18, %v209_v29  ;;  %v295_v34 = vadd.f32 %v485_v18, %v219_v30  ;;  %v192_v35 = vpop.f32.mrf.mxu0  ;;  %v202_v36 = vpop.f32.mrf.mxu1 }
  0xaf   :  { %v284_v43 = vadd.f32 %v485_v18, %v192_v35  ;;  %v288_v44 = vadd.f32 %v485_v18, %v202_v36 }
  0xb0   :  { %v437_v37 = vpack.c.bf16 %v291_v33, %v290_v31  ;;  %v447_v38 = vpack.c.bf16 %v295_v34, %v294_v32 }
  0xb2   :  { %457 = vst [vmem:[%s584_s3 + $0x20] sm:$0xff] %v437_v37  }
  0xb3   :  { %459 = vst [vmem:[%s584_s3 + $0x30] sm:$0xff] %v447_v38  }
  0xb5   :  { %v212_v39 = vpop.f32.mrf.mxu2  ;;  %v222_v40 = vpop.f32.mrf.mxu3 }
  0xb6   :  { %v194_v41 = vpop.f32.mrf.mxu0  ;;  %v204_v42 = vpop.f32.mrf.mxu1  ;;  %v292_v51 = vadd.f32 %v485_v18, %v212_v39  ;;  %v296_v52 = vadd.f32 %v485_v18, %v222_v40 }
  0xb7   :  { %v285_v45 = vadd.f32 %v485_v18, %v194_v41  ;;  %v289_v46 = vadd.f32 %v485_v18, %v204_v42 }
  0xb9   :  { %v422_v47 = vpack.c.bf16 %v285_v45, %v284_v43  ;;  %v432_v48 = vpack.c.bf16 %v289_v46, %v288_v44 }
  0xbb   :  { %454 = vst [vmem:[%s584_s3 + $0x8] sm:$0xff] %v422_v47  }
  0xbc   :  { %456 = vst [vmem:[%s584_s3 + $0x18] sm:$0xff] %v432_v48  }
  0xbd   :  { %v214_v49 = vpop.f32.mrf.mxu2  ;;  %v224_v50 = vpop.f32.mrf.mxu3 }
  0xbe   :  { %v293_v53 = vadd.f32 %v485_v18, %v214_v49  ;;  %v297_v54 = vadd.f32 %v485_v18, %v224_v50 }
  0xc0   :  { %v442_v55 = vpack.c.bf16 %v293_v53, %v292_v51  ;;  %v452_v56 = vpack.c.bf16 %v297_v54, %v296_v52 }
  0xc2   :  { %458 = vst [vmem:[%s584_s3 + $0x28] sm:$0xff] %v442_v55  }
  0xc3   :  { %460 = vst [vmem:[%s584_s3 + $0x38] sm:$0xff] %v452_v56  }

</bundles_post_ra>
